<compile_context>
chip_gen: v6e
topology: v6e:2x2x1
jax: 0.10.0
libtpu: 0.0.40
codegen_flags: <defaults>
</compile_context>

<pallas_src>
import functools

import jax
import jax.numpy as jnp
from jax.experimental import pallas as pl
from jax.experimental.pallas import tpu as pltpu

# ---- static problem sizes (as the layer is used inside Net: dfcnum=8 nodes) --
B = 2          # batch
N = 8          # graph nodes (dfcnum)
F_IN = 33      # in_features
F_OUT = 16     # out_features
ALPHA = 0.2    # LeakyReLU negative slope
NEG_INF = -1.0e12   # same mask value as the PyTorch forward


def gat_kernel(x_ref, adj_ref, waug_ref, o_ref, *,
               n_batch, n_nodes, f_out, alpha):
    """Fused GraphAttentionLayer forward for the whole (stacked) batch.

    x_ref    : (B*N, F_IN)      node features, batch folded into sublanes
    adj_ref  : (B, N, N)        adjacency (float, >0 means edge)
    waug_ref : (F_IN, F_OUT+2)  [W | W@a1 | W@a2]
    o_ref    : (B, N, F_OUT)    ELU(attention @ (x W))
    """
    # One MXU pass: projection + both attention logits for every (batch, node).
    h_all = jnp.dot(x_ref[...], waug_ref[...],
                    preferred_element_type=jnp.float32)          # (B*N, F_OUT+2)
    h = h_all[:, :f_out]                                          # (B*N, F_OUT)
    f1 = h_all[:, f_out:f_out + 1]                                # (B*N, 1)
    # f2 as a row vector: one small transpose, no (N, N) broadcast first.
    f2_row = jnp.transpose(h_all[:, f_out + 1:f_out + 2])         # (1, B*N)

    for b in range(n_batch):                                      # static unroll
        lo, hi = b * n_nodes, (b + 1) * n_nodes
        hb = h[lo:hi, :]                                          # (N, F_OUT)
        adjb = adj_ref[b]                                         # (N, N)

        # e[i, j] = LeakyReLU(a1.h_i + a2.h_j)
        e = f1[lo:hi, :] + f2_row[:, lo:hi]                       # (N, N)
        e = jnp.where(e >= 0, e, alpha * e)                       # LeakyReLU
        e = e * adjb                                              # torch.mul(e, adj)

        # masked softmax over j (dim=2 in the PyTorch code)
        att = jnp.where(adjb > 0, e, NEG_INF)
        att = att - jnp.max(att, axis=-1, keepdims=True)          # stable softmax
        p = jnp.exp(att)
        denom = jnp.sum(p, axis=-1, keepdims=True)
        # Note: if a row of adj had no nonzeros this yields uniform attention
        # over that row's N nodes, exactly like the PyTorch -1e12 masking.
        att = p * pl.reciprocal(denom, approx=True)               # EUP, not VALU divide
        # TODO(synk): F.dropout(attention) omitted (inference / training=False).

        hp = jnp.dot(att, hb, preferred_element_type=jnp.float32)  # (N, F_OUT)
        # concat=True -> ELU (alpha = 1)
        o_ref[b] = jnp.where(hp > 0, hp, jnp.exp(jnp.minimum(hp, 0.0)) - 1.0)


@jax.jit
def gat_forward(inp, adj, W, a):
    """GraphAttentionLayer.forward(inp, adj), concat=True, eval mode."""
    b, n, f_in = inp.shape
    f_out = W.shape[1]
    # Fold a1/a2 into the projection weight (tiny one-time parameter prep):
    # W_aug = [W | W@a1 | W@a2]  ->  one MXU matmul inside the kernel.
    w_aug = jnp.concatenate([W, W @ a[:f_out], W @ a[f_out:]], axis=1)  # (F_IN, F_OUT+2)
    x_stacked = inp.reshape(b * n, f_in)    # fold batch into the sublane (M) dim

    kernel = functools.partial(gat_kernel, n_batch=b, n_nodes=n,
                               f_out=f_out, alpha=ALPHA)
    # grid=() -> a single kernel invocation; with B folded into sublanes there
    # are no per-batch grid steps.  (If B grows large, switch to grid=(B,) with
    # dimension_semantics=("parallel",) so v7x can split batches across its
    # two TensorCores.)
    return pl.pallas_call(
        kernel,
        out_shape=jax.ShapeDtypeStruct((b, n, f_out), jnp.float32),
        in_specs=[
            pl.BlockSpec(memory_space=pltpu.MemorySpace.VMEM),
            pl.BlockSpec(memory_space=pltpu.MemorySpace.VMEM),
            pl.BlockSpec(memory_space=pltpu.MemorySpace.VMEM),
        ],
        out_specs=pl.BlockSpec(memory_space=pltpu.MemorySpace.VMEM),
    )(x_stacked, adj, w_aug)


# ---------------------------------------------------------------------------
# Pure-JAX reference of the PyTorch forward (eval mode), for a sanity check.
# ---------------------------------------------------------------------------
def gat_reference(inp, adj, W, a):
    mm = functools.partial(jnp.matmul, precision=jax.lax.Precision.HIGHEST)
    f_out = W.shape[1]
    h = mm(inp, W)                                      # (B, N, F_OUT)
    f1 = mm(h, a[:f_out])                               # (B, N, 1)
    f2 = mm(h, a[f_out:])                               # (B, N, 1)
    e = f1 + jnp.swapaxes(f2, 1, 2)                     # (B, N, N)
    e = jnp.where(e >= 0, e, ALPHA * e)
    e = e * adj
    att = jnp.where(adj > 0, e, NEG_INF)
    att = jax.nn.softmax(att, axis=2)
    h_prime = mm(att, h)
    return jnp.where(h_prime > 0, h_prime, jnp.expm1(jnp.minimum(h_prime, 0.0)))


def xavier_uniform(key, shape, gain=1.414):
    fan_in, fan_out = shape
    limit = gain * (6.0 / (fan_in + fan_out)) ** 0.5
    return jax.random.uniform(key, shape, jnp.float32, -limit, limit)


if __name__ == "__main__":
    key = jax.random.PRNGKey(0)
    k_x, k_adj, k_w, k_a = jax.random.split(key, 4)

    # Inputs at the shapes the module sees inside Net: (B, N, 33) features,
    # (B, N, N) adjacency with self-loops (so no row is fully masked).
    inp = jax.random.normal(k_x, (B, N, F_IN), jnp.float32)
    adj = (jax.random.uniform(k_adj, (B, N, N)) > 0.4).astype(jnp.float32)
    adj = jnp.maximum(adj, jnp.eye(N, dtype=jnp.float32)[None])

    W = xavier_uniform(k_w, (F_IN, F_OUT))       # (33, 16)
    a = xavier_uniform(k_a, (2 * F_OUT, 1))      # (32, 1)

    out = gat_forward(inp, adj, W, a)
    out = jax.block_until_ready(out)
    assert out.shape == (B, N, F_OUT)
    assert bool(jnp.all(jnp.isfinite(out)))

    ref = gat_reference(inp, adj, W, a)
    # Loose tolerance: approx EUP reciprocal + MXU matmul precision.
    assert bool(jnp.allclose(out, ref, rtol=2e-2, atol=2e-2)), (
        f"max abs err = {float(jnp.max(jnp.abs(out - ref)))}")

    print("KERNEL_OK")
</pallas_src>

<mosaic_0001>
module attributes {stable_mosaic.version = 11 : i64} {
  func.func @gat_kernel(%arg0: memref<16x33xf32, #tpu.memory_space<vmem>>, %arg1: memref<2x8x8xf32, #tpu.memory_space<vmem>>, %arg2: memref<33x18xf32, #tpu.memory_space<vmem>>, %arg3: memref<2x8x16xf32, #tpu.memory_space<vmem>>) attributes {dimension_semantics = [], scalar_prefetch = 0 : i64, scratch_operands = 0 : i64, tpu.core_type = #tpu.core_type<tc>} {
    %c0 = arith.constant 0 : index
    %c0_0 = arith.constant 0 : index
    %0 = vector.load %arg0[%c0, %c0_0] : memref<16x33xf32, #tpu.memory_space<vmem>>, vector<16x33xf32>
    %c0_1 = arith.constant 0 : index
    %c0_2 = arith.constant 0 : index
    %1 = vector.load %arg2[%c0_1, %c0_2] : memref<33x18xf32, #tpu.memory_space<vmem>>, vector<33x18xf32>
    %cst = arith.constant dense<0.000000e+00> : vector<16x18xf32>
    %2 = tpu.matmul %0, %1, %cst {dimension_numbers = #tpu.dot_dimension_numbers<[1], [0], [0], [1], [0, 0, 1, 1], [], []>} : vector<16x33xf32>, vector<33x18xf32>, vector<16x18xf32> -> vector<16x18xf32>
    %3 = vector.extract_strided_slice %2 {offsets = [0, 0], sizes = [16, 16], strides = [1, 1]} : vector<16x18xf32> to vector<16x16xf32>
    %4 = vector.extract_strided_slice %2 {offsets = [0, 16], sizes = [16, 1], strides = [1, 1]} : vector<16x18xf32> to vector<16x1xf32>
    %5 = vector.extract_strided_slice %2 {offsets = [0, 17], sizes = [16, 1], strides = [1, 1]} : vector<16x18xf32> to vector<16x1xf32>
    %6 = tpu.transpose %5, [1, 0] : vector<16x1xf32> -> vector<1x16xf32>
    %7 = vector.extract_strided_slice %3 {offsets = [0, 0], sizes = [8, 16], strides = [1, 1]} : vector<16x16xf32> to vector<8x16xf32>
    %c0_3 = arith.constant 0 : index
    %c0_4 = arith.constant 0 : index
    %c0_5 = arith.constant 0 : index
    %8 = vector.load %arg1[%c0_3, %c0_4, %c0_5] : memref<2x8x8xf32, #tpu.memory_space<vmem>>, vector<1x8x8xf32>
    %9 = vector.shape_cast %8 : vector<1x8x8xf32> to vector<8x8xf32>
    %10 = vector.extract_strided_slice %4 {offsets = [0, 0], sizes = [8, 1], strides = [1, 1]} : vector<16x1xf32> to vector<8x1xf32>
    %11 = vector.extract_strided_slice %6 {offsets = [0, 0], sizes = [1, 8], strides = [1, 1]} : vector<1x16xf32> to vector<1x8xf32>
    %12 = vector.broadcast %10 : vector<8x1xf32> to vector<8x8xf32>
    %13 = vector.broadcast %11 : vector<1x8xf32> to vector<8x8xf32>
    %14 = arith.addf %12, %13 : vector<8x8xf32>
    %cst_6 = arith.constant 0.000000e+00 : f32
    %15 = vector.broadcast %cst_6 : f32 to vector<8x8xf32>
    %16 = arith.cmpf oge, %14, %15 : vector<8x8xf32>
    %cst_7 = arith.constant 2.000000e-01 : f32
    %17 = vector.broadcast %cst_7 : f32 to vector<8x8xf32>
    %18 = arith.mulf %17, %14 : vector<8x8xf32>
    %19 = arith.select %16, %14, %18 : vector<8x8xi1>, vector<8x8xf32>
    %20 = arith.mulf %19, %9 : vector<8x8xf32>
    %cst_8 = arith.constant 0.000000e+00 : f32
    %21 = vector.broadcast %cst_8 : f32 to vector<8x8xf32>
    %22 = arith.cmpf ogt, %9, %21 : vector<8x8xf32>
    %cst_9 = arith.constant -9.99999995E+11 : f32
    %23 = vector.broadcast %cst_9 : f32 to vector<8x8xf32>
    %24 = arith.select %22, %20, %23 : vector<8x8xi1>, vector<8x8xf32>
    %cst_10 = arith.constant dense<0xFF800000> : vector<8xf32>
    %25 = vector.multi_reduction <maximumf>, %24, %cst_10 [1] : vector<8x8xf32> to vector<8xf32>
    %26 = vector.shape_cast %25 : vector<8xf32> to vector<8x1xf32>
    %27 = vector.broadcast %26 : vector<8x1xf32> to vector<8x8xf32>
    %28 = arith.subf %24, %27 : vector<8x8xf32>
    %29 = math.exp %28 : vector<8x8xf32>
    %cst_11 = arith.constant dense<0.000000e+00> : vector<8xf32>
    %30 = vector.multi_reduction <add>, %29, %cst_11 [1] : vector<8x8xf32> to vector<8xf32>
    %31 = vector.shape_cast %30 : vector<8xf32> to vector<8x1xf32>
    %32 = tpu.reciprocal %31 {approx = true} : vector<8x1xf32> -> vector<8x1xf32>
    %33 = vector.broadcast %32 : vector<8x1xf32> to vector<8x8xf32>
    %34 = arith.mulf %29, %33 : vector<8x8xf32>
    %cst_12 = arith.constant dense<0.000000e+00> : vector<8x16xf32>
    %35 = tpu.matmul %34, %7, %cst_12 {dimension_numbers = #tpu.dot_dimension_numbers<[1], [0], [0], [1], [0, 0, 1, 1], [], []>} : vector<8x8xf32>, vector<8x16xf32>, vector<8x16xf32> -> vector<8x16xf32>
    %cst_13 = arith.constant 0.000000e+00 : f32
    %36 = vector.broadcast %cst_13 : f32 to vector<8x16xf32>
    %37 = arith.cmpf ogt, %35, %36 : vector<8x16xf32>
    %cst_14 = arith.constant 0.000000e+00 : f32
    %38 = vector.broadcast %cst_14 : f32 to vector<8x16xf32>
    %39 = arith.minimumf %35, %38 : vector<8x16xf32>
    %40 = math.exp %39 : vector<8x16xf32>
    %cst_15 = arith.constant 1.000000e+00 : f32
    %41 = vector.broadcast %cst_15 : f32 to vector<8x16xf32>
    %42 = arith.subf %40, %41 : vector<8x16xf32>
    %43 = arith.select %37, %35, %42 : vector<8x16xi1>, vector<8x16xf32>
    %c0_16 = arith.constant 0 : index
    %c0_17 = arith.constant 0 : index
    %c0_18 = arith.constant 0 : index
    %44 = vector.load %arg3[%c0_16, %c0_17, %c0_18] : memref<2x8x16xf32, #tpu.memory_space<vmem>>, vector<1x8x16xf32>
    %45 = vector.shape_cast %44 : vector<1x8x16xf32> to vector<8x16xf32>
    %46 = vector.shape_cast %43 : vector<8x16xf32> to vector<1x8x16xf32>
    tpu.vector_store %arg3[%c0_16, %c0_17, %c0_18], %46 {strides = array<i32>} : memref<2x8x16xf32, #tpu.memory_space<vmem>>, vector<1x8x16xf32>,
    %47 = vector.extract_strided_slice %3 {offsets = [8, 0], sizes = [8, 16], strides = [1, 1]} : vector<16x16xf32> to vector<8x16xf32>
    %c1 = arith.constant 1 : index
    %c0_19 = arith.constant 0 : index
    %c0_20 = arith.constant 0 : index
    %48 = vector.load %arg1[%c1, %c0_19, %c0_20] : memref<2x8x8xf32, #tpu.memory_space<vmem>>, vector<1x8x8xf32>
    %49 = vector.shape_cast %48 : vector<1x8x8xf32> to vector<8x8xf32>
    %50 = vector.extract_strided_slice %4 {offsets = [8, 0], sizes = [8, 1], strides = [1, 1]} : vector<16x1xf32> to vector<8x1xf32>
    %51 = vector.extract_strided_slice %6 {offsets = [0, 8], sizes = [1, 8], strides = [1, 1]} : vector<1x16xf32> to vector<1x8xf32>
    %52 = vector.broadcast %50 : vector<8x1xf32> to vector<8x8xf32>
    %53 = vector.broadcast %51 : vector<1x8xf32> to vector<8x8xf32>
    %54 = arith.addf %52, %53 : vector<8x8xf32>
    %cst_21 = arith.constant 0.000000e+00 : f32
    %55 = vector.broadcast %cst_21 : f32 to vector<8x8xf32>
    %56 = arith.cmpf oge, %54, %55 : vector<8x8xf32>
    %cst_22 = arith.constant 2.000000e-01 : f32
    %57 = vector.broadcast %cst_22 : f32 to vector<8x8xf32>
    %58 = arith.mulf %57, %54 : vector<8x8xf32>
    %59 = arith.select %56, %54, %58 : vector<8x8xi1>, vector<8x8xf32>
    %60 = arith.mulf %59, %49 : vector<8x8xf32>
    %cst_23 = arith.constant 0.000000e+00 : f32
    %61 = vector.broadcast %cst_23 : f32 to vector<8x8xf32>
    %62 = arith.cmpf ogt, %49, %61 : vector<8x8xf32>
    %cst_24 = arith.constant -9.99999995E+11 : f32
    %63 = vector.broadcast %cst_24 : f32 to vector<8x8xf32>
    %64 = arith.select %62, %60, %63 : vector<8x8xi1>, vector<8x8xf32>
    %cst_25 = arith.constant dense<0xFF800000> : vector<8xf32>
    %65 = vector.multi_reduction <maximumf>, %64, %cst_25 [1] : vector<8x8xf32> to vector<8xf32>
    %66 = vector.shape_cast %65 : vector<8xf32> to vector<8x1xf32>
    %67 = vector.broadcast %66 : vector<8x1xf32> to vector<8x8xf32>
    %68 = arith.subf %64, %67 : vector<8x8xf32>
    %69 = math.exp %68 : vector<8x8xf32>
    %cst_26 = arith.constant dense<0.000000e+00> : vector<8xf32>
    %70 = vector.multi_reduction <add>, %69, %cst_26 [1] : vector<8x8xf32> to vector<8xf32>
    %71 = vector.shape_cast %70 : vector<8xf32> to vector<8x1xf32>
    %72 = tpu.reciprocal %71 {approx = true} : vector<8x1xf32> -> vector<8x1xf32>
    %73 = vector.broadcast %72 : vector<8x1xf32> to vector<8x8xf32>
    %74 = arith.mulf %69, %73 : vector<8x8xf32>
    %cst_27 = arith.constant dense<0.000000e+00> : vector<8x16xf32>
    %75 = tpu.matmul %74, %47, %cst_27 {dimension_numbers = #tpu.dot_dimension_numbers<[1], [0], [0], [1], [0, 0, 1, 1], [], []>} : vector<8x8xf32>, vector<8x16xf32>, vector<8x16xf32> -> vector<8x16xf32>
    %cst_28 = arith.constant 0.000000e+00 : f32
    %76 = vector.broadcast %cst_28 : f32 to vector<8x16xf32>
    %77 = arith.cmpf ogt, %75, %76 : vector<8x16xf32>
    %cst_29 = arith.constant 0.000000e+00 : f32
    %78 = vector.broadcast %cst_29 : f32 to vector<8x16xf32>
    %79 = arith.minimumf %75, %78 : vector<8x16xf32>
    %80 = math.exp %79 : vector<8x16xf32>
    %cst_30 = arith.constant 1.000000e+00 : f32
    %81 = vector.broadcast %cst_30 : f32 to vector<8x16xf32>
    %82 = arith.subf %80, %81 : vector<8x16xf32>
    %83 = arith.select %77, %75, %82 : vector<8x16xi1>, vector<8x16xf32>
    %c1_31 = arith.constant 1 : index
    %c0_32 = arith.constant 0 : index
    %c0_33 = arith.constant 0 : index
    %84 = vector.load %arg3[%c1_31, %c0_32, %c0_33] : memref<2x8x16xf32, #tpu.memory_space<vmem>>, vector<1x8x16xf32>
    %85 = vector.shape_cast %84 : vector<1x8x16xf32> to vector<8x16xf32>
    %86 = vector.shape_cast %83 : vector<8x16xf32> to vector<1x8x16xf32>
    tpu.vector_store %arg3[%c1_31, %c0_32, %c0_33], %86 {strides = array<i32>} : memref<2x8x16xf32, #tpu.memory_space<vmem>>, vector<1x8x16xf32>,
    return
  }
}

</mosaic_0001>

<bundles_post_ra>
// kernel: gat_forward.1
= control target key start
LH: loop header
LB: loop body
LE: loop exit
PB: predicated region body
PF: predicated region fallthrough
CT: control target
= control target key end

     0   :  { %vm29_vm0 = vcmask 1040384   ;;  %vm22_vm1 = vcmask 269312   ;;  %s551_s0 = inlined_call_operand.vmem [shape: f32[16,33], index: 0, kind: input, shape index: {}]   ;;  %s552_s1 = inlined_call_operand.vmem [shape: f32[2,8,8], index: 1, kind: input, shape index: {}]   ;;  %s553_s2 = inlined_call_operand.vmem [shape: f32[33,18], index: 2, kind: input, shape index: {}]   ;;  %s554_s3 = inlined_call_operand.hbm [shape: f32[2,8,16], index: 3, kind: output, shape index: {}]  }
   0x1   :  { %v21_v0 = vld [vmem:[%s553_s2 + $0x20] sm:$0x1]  ;;  %v20_v1 = vld [vmem:[%s553_s2 + $0x18] sm:$0xff]  ;;  %v19_v3 = vld [vmem:[%s553_s2 + $0x10] sm:$0xff] }
   0x2   :  { %405 = vmatprep.subr.msk.mxu0 %vm29_vm0, %v21_v0  ;;  %v15_v2 = vld [vmem:[%s551_s0] sm:$0xff] }
   0x3   :  { %406 = vmatpush3.msk.msra.mxu0 %vm29_vm0, %v21_v0  ;;  %415 = vmatprep.mubr.msk.f32.mxu0 %vm22_vm1, %v15_v2 }
   0x4   :  { %8 = vsyncpa [#allocation3], 0  ;;  %407 = vmatprep.subr.mxu0 %v20_v1  ;;  %v472_v4 = vmov 16   ;;  %v18_v5 = vld [vmem:[%s553_s2 + $0x8] sm:$0xff]  ;;  %v17_v6 = vld [vmem:[%s553_s2] sm:$0xff]  ;;  %v473_v8 = vmov 0.0   ;;  %v153_v14 = vlaneseq }
   0x5   :  { %436 = vset.pattern.permute.xlu1 %v472_v4  ;;  %408 = vmatpush3.msra.mxu0 %v20_v1  ;;  %v16_v7 = vld [vmem:[%s551_s0 + $0x8] sm:$0xff]  ;;  %s474_s27 = smov 111   ;;  %s475_s0 = smov 8   ;;  %v148_v28 = vld [vmem:[%s552_s1] sm:$0xff]  ;;  %vm164_vm5 = vcmask 64512   ;;  %vm477_vm7 = vmmov 0  }
   0x6   :  { %409 = vmatprep.subr.mxu0 %v19_v3  ;;  %418 = vmatprep.subr.mxu1 %v473_v8  ;;  %v391_v11 = vld [vmem:[%s552_s1 + $0x8] sm:$0xff]  ;;  %v154_v15 = vshrl.u32 %v153_v14, 7  ;;  %s476_s28 = smov 120   ;;  %vm162_vm4 = vcmp.gt.f32.partialorder %v148_v28, 0.0  ;;  %vm255_vm8 = vcmask 130048   ;;  %s478_s1 = smov [#allocation2]  }
   0x7   :  { %410 = vmatpush3.msra.mxu0 %v19_v3  ;;  %vm272_vm6 = vcmp.gt.f32.partialorder %v391_v11, 0.0  ;;  %420 = vmatprep.mubr.msk.f32.mxu1 %vm477_vm7, %v473_v8  ;;  %s375_s4 = sshll.u32 %s478_s1, 4  ;;  %s376_s4 = int_to_ptr.vmem [resolvable:$true] %s375_s4 }
   0x8   :  { %411 = vmatprep.subr.mxu0 %v18_v5  ;;  %v155_v16 = vsub.s32 0, %v154_v15  ;;  %s450_s5 = scalar_lea.vmem %s376_s4, 256  ;;  %p455_p1 = scmp.lt.s32.totalorder %s376_s4, %s376_s4 }
   0x9   :  { %412 = vmatpush3.msra.mxu0 %v18_v5  ;;  %p451_p0 = scmp.ne.s32.totalorder %s376_s4, %s450_s5  ;;  %p456_p2 = scmp.lt.s32.totalorder %s450_s5, %s450_s5 }
   0xa   :  { %413 = vmatprep.subr.mxu0 %v17_v6 }
   0xb   :  { %414 = vmatpush3.msra.mxu0 %v17_v6  ;;  %p457_p3 = por %p456_p2, %p455_p1 }
   0xc   :  { %416 = vmatmul.mubr.msk.f32.vlgmr.msra.gmra.mxu0 %vm22_vm1, %v16_v7 }
   0xd   :  { %p458_p4 = pnand %p457_p3, %p451_p0 }
  0xcc   :  { %v524_v9 = vpop.f32.mrf.mxu0 }
  0xcd   :  { %260 = vperm.xlu1 %436, %v524_v9  }
  0xce   :  { %v99_v10 = vpop.f32.mrf.mxu0 }
  0xcf   :  { %110 = vrot.lane.b32.xlu0 %v99_v10, %s474_s27  ;;  %419 = vmatpush3.msra.mxu1 %v99_v10 }
  0xd0   :  { %423 = vmatprep.subr.mxu1 %v473_v8 }
  0xd1   :  { %268 = vrot.lane.b32.xlu1 %v391_v11, %s475_s0 }
  0xd3   :  { %112 = vrot.lane.b32.xlu0 %v524_v9, %s474_s27 }
  0xd5   :  { %150 = vperm.xlu1 %436, %v99_v10  }
 0x141   :  { %v111_v12 = vpop.permute.xlu0 %110 }
 0x142   :  { %116 = vxpose.xlu0.b32.start [1/2] (short) (narrow) %v111_v12, 8 }
 0x145   :  { %v113_v13 = vpop.permute.xlu0 %112 }
 0x146   :  { %117 = vxpose.xlu0.b32.end [2/2] (short) (narrow) %v113_v13, 8 }
 0x148   :  { %v261_v18 = vpop.permute.xlu1 %260 }
 0x14c   :  { %v269_v22 = vpop.permute.xlu1 %268 }
 0x150   :  { %v151_v25 = vpop.permute.xlu1 %150 }
 0x16f   :  { %437 = vset.pattern.permute.xlu0 %v472_v4 }
 0x1be   :  { %v132_v17 = vpop.trf.xlu0 }
 0x1bf   :  { %v156_v19 = vrot.slane %v132_v17, %v155_v16 }
 0x1c1   :  { %v263_v20 = vadd.f32 %v261_v18, %v156_v19  ;;  %v157_v26 = vadd.f32 %v156_v19, %v151_v25 }
 0x1c3   :  { %vm264_vm2 = vcmp.ge.f32.partialorder %v263_v20, 0.0  ;;  %v265_v21 = vmul.f32 0.2, %v263_v20  ;;  %v159_v27 = vmul.f32 0.2, %v157_v26  ;;  %vm158_vm3 = vcmp.ge.f32.partialorder %v157_v26, 0.0 }
 0x1c5   :  { %v266_v23 = vsel %vm264_vm2, %v263_v20, %v265_v21  ;;  %v160_v29 = vsel %vm158_vm3, %v157_v26, %v159_v27 }
 0x1c6   :  { %v271_v24 = vmul.f32 %v269_v22, %v266_v23  ;;  %v161_v30 = vmul.f32 %v160_v29, %v148_v28 }
 0x1c8   :  { %274 = vrot.lane.b32.xlu1 %v271_v24, %s476_s28  ;;  %v163_v31 = vsel %vm162_vm4, %v161_v30, -1e+12 }
 0x1c9   :  { %v165_v32 = vsel %vm164_vm5, %v163_v31, -inf }
 0x1ec   :  { %166 = vmax.xlane.f32.xlu1 %v165_v32 }
 0x23a   :  { %v275_v33 = vpop.permute.xlu1 %274 }
 0x23b   :  { %v277_v34 = vsel %vm272_vm6, %v275_v33, -1e+12 }
 0x23c   :  { %v278_v35 = vsel %vm164_vm5, %v277_v34, -inf }
 0x23d   :  { %279 = vmax.xlane.f32.xlu0 %v278_v35 }
 0x275   :  { %v167_v36 = vpop.xlane.xlu1 %166 }
 0x276   :  { %v168_v37 = vsub.f32 %v163_v31, %v167_v36 }
 0x278   :  { %v169_v38 = vmul.f32 1.442695, %v168_v37 }
 0x27a   :  { %438 = vpow2.f32 %v169_v38 }
 0x287   :  { %v439_v39 = vpop.eup %438 }
 0x288   :  { %v171_v40 = vsel %vm164_vm5, %v439_v39, 0.0 }
 0x289   :  { %172 = vadd.xlane.f32.xlu1 %v171_v40 }
 0x2c6   :  { %v280_v41 = vpop.xlane.xlu0 %279 }
 0x2c7   :  { %v281_v42 = vsub.f32 %v277_v34, %v280_v41 }
 0x2c9   :  { %v282_v43 = vmul.f32 1.442695, %v281_v42 }
 0x2cb   :  { %440 = vpow2.f32 %v282_v43 }
 0x2d8   :  { %v441_v44 = vpop.eup %440 }
 0x2d9   :  { %v284_v45 = vsel %vm164_vm5, %v441_v44, 0.0 }
 0x2da   :  { %285 = vadd.xlane.f32.xlu1 %v284_v45 }
 0x312   :  { %v173_v46 = vpop.xlane.xlu1 %172 }
 0x313   :  { %442 = vrcp.f32 %v173_v46 }
 0x320   :  { %v443_v47 = vpop.eup %442 }
 0x321   :  { %v175_v48 = vmul.f32 %v443_v47, %v439_v39 }
 0x323   :  { %421 = vmatmul.mubr.msk.f32.vlgmr.msra.gmra.mxu1 %vm164_vm5, %v175_v48 }
 0x324   :  { %424 = vmatpush3.msra.mxu1 %v524_v9  ;;  %425 = vmatprep.mubr.msk.f32.mxu1 %vm477_vm7, %v473_v8 }
 0x363   :  { %v286_v49 = vpop.xlane.xlu1 %285 }
 0x364   :  { %444 = vrcp.f32 %v286_v49 }
 0x371   :  { %v445_v50 = vpop.eup %444 }
 0x372   :  { %v288_v51 = vmul.f32 %v445_v50, %v441_v44 }
 0x374   :  { %426 = vmatmul.mubr.msk.f32.vlgmr.msra.gmra.mxu1 %vm164_vm5, %v288_v51 }
 0x3e3   :  { %v245_v52 = vpop.f32.mrf.mxu1 }
 0x3e4   :  { %v250_v53 = vmin.f32 %v245_v52, 0.0  ;;  %vm249_vm9 = vcmp.gt.f32.partialorder %v245_v52, 0.0 }
 0x3e5   :  { %v422_v54 = vpop.f32.mrf.mxu1 }
 0x3e6   :  { %v251_v55 = vmul.f32 1.442695, %v250_v53 }
 0x3e8   :  { %446 = vpow2.f32 %v251_v55 }
 0x3f5   :  { %v447_v56 = vpop.eup %446 }
 0x3f6   :  { %v390_v57 = vadd.f32 -1.0, %v447_v56 }
 0x3f8   :  { %v254_v58 = vsel %vm249_vm9, %v245_v52, %v390_v57 }
 0x3f9   :  { %256 = vst.msk [vmem:[#allocation2] sm:$0xff] %vm255_vm8, %v254_v58 }
 0x434   :  { %v358_v59 = vpop.f32.mrf.mxu1 }
 0x435   :  { %v363_v60 = vmin.f32 %v358_v59, 0.0  ;;  %vm362_vm10 = vcmp.gt.f32.partialorder %v358_v59, 0.0 }
 0x436   :  { %v427_v61 = vpop.f32.mrf.mxu1 }
 0x437   :  { %v364_v62 = vmul.f32 1.442695, %v363_v60 }
 0x439   :  { %448 = vpow2.f32 %v364_v62 }
 0x446   :  { %v449_v63 = vpop.eup %448 }
 0x447   :  { %v393_v0 = vadd.f32 -1.0, %v449_v63 }
 0x449   :  { %v367_v1 = vsel %vm362_vm10, %v358_v59, %v393_v0 }
 0x44a   :  { %369 = vst.msk [vmem:[#allocation2 + $0x8] sm:$0xff] %vm255_vm8, %v367_v1 }
 0x44b   :  { %461 = shalt.err (!%p458_p4)
}
 0x44c   :  { %s479_s6 = smov 128  }
 0x44d   :  { %381 = dma.vmem_to_hbm [thread:$0]  %s376_s4, 256, %s554_s3, [#allocation3], %s479_s6, %s479_s6, %s475_s0  }
 0x44e   :  { %470 = dma.done.wait [#allocation3], 256  }
 0x44f   :  { %471 = vsyncadd [#allocation3], 4294967040 }
 0x450   :  { %385 = vsyncpa [#allocation3], 1 }

</bundles_post_ra>
